<compile_context>
chip_gen: v6e
topology: v6e:2x2x1
jax: 0.10.0
libtpu: 0.0.40
codegen_flags: <defaults>
</compile_context>

<pallas_src>
import jax
import jax.numpy as jnp
from jax.experimental import pallas as pl
from jax.experimental.pallas import tpu as pltpu

# ---- problem sizes (small, consistent with the module's forward) ----
B = 2        # pipelines in the batch
N = 8        # padded number of nodes per pipeline
F_IN = 16    # raw (heterogeneous) node feature dim
T = 4        # number of node types
HID = 32     # node_homogenizer.out_dim == gnn in_size
OUT = 32     # gnn.out_dim == pipeline embedding dim
BN = B * N   # flattened node count


def pipeline_encoder_kernel(x_ref, sel_ref, a_ref, mask_ref, pool_ref,
                            wcat_ref, bcat_ref, fold_ref,
                            w1_ref, b1_ref, w2_ref, b2_ref,
                            out_ref):
    x = x_ref[...]        # (BN, F_IN)   flattened node features
    sel = sel_ref[...]    # (BN, T*HID)  onehot expanded along the HID blocks
    a = a_ref[...]        # (BN, BN)     block-diag normalized adj (with self-loops)
    mask = mask_ref[...]  # (BN, 1)      1.0 real node, 0.0 padding
    pool = pool_ref[...]  # (B, BN)      per-pipeline mean-pool weights

    # ---- node homogenizer: single lane-dense matmul over all T types ----
    # proj[:, t*HID:(t+1)*HID] = x @ W_t + b_t ; select with `sel`, fold over t.
    proj = jnp.dot(x, wcat_ref[...], preferred_element_type=jnp.float32) + bcat_ref[...]
    h = jnp.dot(proj * sel, fold_ref[...], preferred_element_type=jnp.float32) * mask

    # ---- GCN layer 1 (adjacency already degree-normalized, self-loops added) ----
    agg1 = jnp.dot(a, h, preferred_element_type=jnp.float32)
    h1 = jnp.maximum(
        jnp.dot(agg1, w1_ref[...], preferred_element_type=jnp.float32) + b1_ref[...],
        0.0) * mask

    # ---- GCN layer 2 ----
    agg2 = jnp.dot(a, h1, preferred_element_type=jnp.float32)
    h2 = jnp.maximum(
        jnp.dot(agg2, w2_ref[...], preferred_element_type=jnp.float32) + b2_ref[...],
        0.0) * mask

    # ---- global mean pooling over valid nodes (one matmul, one (B,OUT) store) ----
    out_ref[...] = jnp.dot(pool, h2, preferred_element_type=jnp.float32)


def pipeline_encoder(x, node_types, adj, node_mask, params):
    """x: [B,N,F_IN] f32, node_types: [B,N] i32, adj: [B,N,N] f32,
    node_mask: [B,N] f32. Returns [B,OUT] f32 pipeline embeddings."""
    wt, bt, w1, b1, w2, b2 = params

    # ---- plain-JAX glue (elementwise / reshape; fused by XLA) ----
    onehot = jax.nn.one_hot(node_types, T, dtype=jnp.float32)        # (B, N, T)
    mask3 = node_mask[..., None]                                     # (B, N, 1)

    # masked adjacency + self-loops on real nodes, degree-normalized once
    adj_m = adj * mask3 * jnp.swapaxes(mask3, 1, 2)
    a = adj_m + jnp.eye(N, dtype=jnp.float32)[None] * mask3
    deg = jnp.sum(a, axis=-1, keepdims=True)
    inv_deg = jnp.where(deg > 0.0, 1.0 / deg, 0.0)
    a_norm = a * inv_deg                                             # (B, N, N)

    # pack per-pipeline adjacencies block-diagonally -> one (BN, BN) matrix
    eye_b = jnp.eye(B, dtype=jnp.float32)
    a_bd = (eye_b[:, None, :, None] * a_norm[:, :, None, :]).reshape(BN, BN)

    # flattened node features / mask / onehot selection mask
    x_flat = x.reshape(BN, F_IN)
    mask_flat = node_mask.reshape(BN, 1)
    sel = jnp.repeat(onehot.reshape(BN, T), HID, axis=-1)            # (BN, T*HID)

    # per-pipeline mean-pool weights (guard against fully padded pipelines)
    n_valid = jnp.maximum(jnp.sum(node_mask, axis=1, keepdims=True), 1.0)   # (B,1)
    pool_w = node_mask / n_valid                                            # (B,N)
    pool_mat = (eye_b[:, :, None] * pool_w[None, :, :]).reshape(B, BN)      # (B,BN)

    # concatenated per-type weights: W_cat[:, t*HID:(t+1)*HID] = W_t
    w_cat = jnp.transpose(wt, (1, 0, 2)).reshape(F_IN, T * HID)      # (F_IN, 128)
    b_cat = bt.reshape(1, T * HID)                                   # (1, 128)
    fold = jnp.tile(jnp.eye(HID, dtype=jnp.float32), (T, 1))         # (T*HID, HID)

    vmem = pl.BlockSpec(memory_space=pltpu.MemorySpace.VMEM)
    out = pl.pallas_call(
        pipeline_encoder_kernel,
        out_shape=jax.ShapeDtypeStruct((B, OUT), jnp.float32),
        in_specs=[vmem] * 12,
        out_specs=vmem,
    )(x_flat, sel, a_bd, mask_flat, pool_mat,
      w_cat, b_cat, fold, w1, b1, w2, b2)
    return out


def reference(x, node_types, adj, node_mask, params):
    """Pure-JAX reference of the same forward (for correctness checking)."""
    wt, bt, w1, b1, w2, b2 = params
    onehot = jax.nn.one_hot(node_types, T, dtype=jnp.float32)
    mask3 = node_mask[..., None]
    h = (jnp.einsum('bnf,bnt,tfh->bnh', x, onehot, wt)
         + jnp.einsum('bnt,tlh->bnh', onehot, bt)) * mask3
    adj_m = adj * mask3 * jnp.swapaxes(mask3, 1, 2)
    a = adj_m + jnp.eye(N, dtype=jnp.float32)[None] * mask3
    deg = jnp.sum(a, axis=-1, keepdims=True)
    inv_deg = jnp.where(deg > 0.0, 1.0 / deg, 0.0)
    agg1 = jnp.einsum('bij,bjh->bih', a, h) * inv_deg
    h1 = jnp.maximum(agg1 @ w1 + b1, 0.0) * mask3
    agg2 = jnp.einsum('bij,bjh->bih', a, h1) * inv_deg
    h2 = jnp.maximum(agg2 @ w2 + b2, 0.0) * mask3
    n_valid = jnp.maximum(jnp.sum(node_mask, axis=1, keepdims=True), 1.0)
    return jnp.sum(h2, axis=1) / n_valid


def init_params(key):
    ks = jax.random.split(key, 6)
    wt = 0.1 * jax.random.normal(ks[0], (T, F_IN, HID), jnp.float32)
    bt = 0.1 * jax.random.normal(ks[1], (T, 1, HID), jnp.float32)
    w1 = 0.1 * jax.random.normal(ks[2], (HID, HID), jnp.float32)
    b1 = 0.1 * jax.random.normal(ks[3], (1, HID), jnp.float32)
    w2 = 0.1 * jax.random.normal(ks[4], (HID, OUT), jnp.float32)
    b2 = 0.1 * jax.random.normal(ks[5], (1, OUT), jnp.float32)
    return wt, bt, w1, b1, w2, b2


if __name__ == "__main__":
    key = jax.random.PRNGKey(0)
    k_x, k_t, k_a, k_p = jax.random.split(key, 4)

    # Deterministic synthetic heterogeneous-pipeline batch (dense/padded form).
    # TODO(synk): HeterogeneousBatch / PyG graph bookkeeping is represented as
    # dense padded tensors (features, type one-hot, adjacency, node mask).
    x = jax.random.normal(k_x, (B, N, F_IN), jnp.float32)
    node_types = jax.random.randint(k_t, (B, N), 0, T, jnp.int32)
    raw = (jax.random.uniform(k_a, (B, N, N)) > 0.6).astype(jnp.float32)
    adj = jnp.maximum(raw, raw.transpose(0, 2, 1))
    # second pipeline has only 6 real nodes (padding demo)
    node_mask = jnp.stack([
        jnp.ones((N,), jnp.float32),
        jnp.concatenate([jnp.ones((6,), jnp.float32), jnp.zeros((2,), jnp.float32)]),
    ])

    params = init_params(k_p)

    emb = pipeline_encoder(x, node_types, adj, node_mask, params)
    jax.block_until_ready(emb)

    ref = reference(x, node_types, adj, node_mask, params)
    assert emb.shape == (B, OUT) and bool(jnp.all(jnp.isfinite(emb)))
    assert bool(jnp.allclose(emb, ref, rtol=1e-4, atol=1e-5))
    print("KERNEL_OK")
</pallas_src>

<mosaic_0001>
module attributes {stable_mosaic.version = 11 : i64} {
  func.func @pipeline_encoder_kernel(%arg0: memref<16x16xf32, #tpu.memory_space<vmem>>, %arg1: memref<16x128xf32, #tpu.memory_space<vmem>>, %arg2: memref<16x16xf32, #tpu.memory_space<vmem>>, %arg3: memref<16x1xf32, #tpu.memory_space<vmem>>, %arg4: memref<2x16xf32, #tpu.memory_space<vmem>>, %arg5: memref<16x128xf32, #tpu.memory_space<vmem>>, %arg6: memref<1x128xf32, #tpu.memory_space<vmem>>, %arg7: memref<128x32xf32, #tpu.memory_space<vmem>>, %arg8: memref<32x32xf32, #tpu.memory_space<vmem>>, %arg9: memref<1x32xf32, #tpu.memory_space<vmem>>, %arg10: memref<32x32xf32, #tpu.memory_space<vmem>>, %arg11: memref<1x32xf32, #tpu.memory_space<vmem>>, %arg12: memref<2x32xf32, #tpu.memory_space<vmem>>) attributes {dimension_semantics = [], scalar_prefetch = 0 : i64, scratch_operands = 0 : i64, tpu.core_type = #tpu.core_type<tc>} {
    %c0 = arith.constant 0 : index
    %c0_0 = arith.constant 0 : index
    %0 = vector.load %arg0[%c0, %c0_0] : memref<16x16xf32, #tpu.memory_space<vmem>>, vector<16x16xf32>
    %c0_1 = arith.constant 0 : index
    %c0_2 = arith.constant 0 : index
    %1 = vector.load %arg1[%c0_1, %c0_2] : memref<16x128xf32, #tpu.memory_space<vmem>>, vector<16x128xf32>
    %c0_3 = arith.constant 0 : index
    %c0_4 = arith.constant 0 : index
    %2 = vector.load %arg2[%c0_3, %c0_4] : memref<16x16xf32, #tpu.memory_space<vmem>>, vector<16x16xf32>
    %c0_5 = arith.constant 0 : index
    %c0_6 = arith.constant 0 : index
    %3 = vector.load %arg3[%c0_5, %c0_6] : memref<16x1xf32, #tpu.memory_space<vmem>>, vector<16x1xf32>
    %c0_7 = arith.constant 0 : index
    %c0_8 = arith.constant 0 : index
    %4 = vector.load %arg4[%c0_7, %c0_8] : memref<2x16xf32, #tpu.memory_space<vmem>>, vector<2x16xf32>
    %c0_9 = arith.constant 0 : index
    %c0_10 = arith.constant 0 : index
    %5 = vector.load %arg5[%c0_9, %c0_10] : memref<16x128xf32, #tpu.memory_space<vmem>>, vector<16x128xf32>
    %cst = arith.constant dense<0.000000e+00> : vector<16x128xf32>
    %6 = tpu.matmul %0, %5, %cst {dimension_numbers = #tpu.dot_dimension_numbers<[1], [0], [0], [1], [0, 0, 1, 1], [], []>} : vector<16x16xf32>, vector<16x128xf32>, vector<16x128xf32> -> vector<16x128xf32>
    %c0_11 = arith.constant 0 : index
    %c0_12 = arith.constant 0 : index
    %7 = vector.load %arg6[%c0_11, %c0_12] : memref<1x128xf32, #tpu.memory_space<vmem>>, vector<1x128xf32>
    %8 = vector.broadcast %7 : vector<1x128xf32> to vector<16x128xf32>
    %9 = arith.addf %6, %8 : vector<16x128xf32>
    %10 = arith.mulf %9, %1 : vector<16x128xf32>
    %c0_13 = arith.constant 0 : index
    %c0_14 = arith.constant 0 : index
    %11 = vector.load %arg7[%c0_13, %c0_14] : memref<128x32xf32, #tpu.memory_space<vmem>>, vector<128x32xf32>
    %cst_15 = arith.constant dense<0.000000e+00> : vector<16x32xf32>
    %12 = tpu.matmul %10, %11, %cst_15 {dimension_numbers = #tpu.dot_dimension_numbers<[1], [0], [0], [1], [0, 0, 1, 1], [], []>} : vector<16x128xf32>, vector<128x32xf32>, vector<16x32xf32> -> vector<16x32xf32>
    %13 = vector.broadcast %3 : vector<16x1xf32> to vector<16x32xf32>
    %14 = arith.mulf %12, %13 : vector<16x32xf32>
    %cst_16 = arith.constant dense<0.000000e+00> : vector<16x32xf32>
    %15 = tpu.matmul %2, %14, %cst_16 {dimension_numbers = #tpu.dot_dimension_numbers<[1], [0], [0], [1], [0, 0, 1, 1], [], []>} : vector<16x16xf32>, vector<16x32xf32>, vector<16x32xf32> -> vector<16x32xf32>
    %c0_17 = arith.constant 0 : index
    %c0_18 = arith.constant 0 : index
    %16 = vector.load %arg8[%c0_17, %c0_18] : memref<32x32xf32, #tpu.memory_space<vmem>>, vector<32x32xf32>
    %cst_19 = arith.constant dense<0.000000e+00> : vector<16x32xf32>
    %17 = tpu.matmul %15, %16, %cst_19 {dimension_numbers = #tpu.dot_dimension_numbers<[1], [0], [0], [1], [0, 0, 1, 1], [], []>} : vector<16x32xf32>, vector<32x32xf32>, vector<16x32xf32> -> vector<16x32xf32>
    %c0_20 = arith.constant 0 : index
    %c0_21 = arith.constant 0 : index
    %18 = vector.load %arg9[%c0_20, %c0_21] : memref<1x32xf32, #tpu.memory_space<vmem>>, vector<1x32xf32>
    %19 = vector.broadcast %18 : vector<1x32xf32> to vector<16x32xf32>
    %20 = arith.addf %17, %19 : vector<16x32xf32>
    %cst_22 = arith.constant 0.000000e+00 : f32
    %21 = vector.broadcast %cst_22 : f32 to vector<16x32xf32>
    %22 = arith.maximumf %20, %21 : vector<16x32xf32>
    %23 = vector.broadcast %3 : vector<16x1xf32> to vector<16x32xf32>
    %24 = arith.mulf %22, %23 : vector<16x32xf32>
    %cst_23 = arith.constant dense<0.000000e+00> : vector<16x32xf32>
    %25 = tpu.matmul %2, %24, %cst_23 {dimension_numbers = #tpu.dot_dimension_numbers<[1], [0], [0], [1], [0, 0, 1, 1], [], []>} : vector<16x16xf32>, vector<16x32xf32>, vector<16x32xf32> -> vector<16x32xf32>
    %c0_24 = arith.constant 0 : index
    %c0_25 = arith.constant 0 : index
    %26 = vector.load %arg10[%c0_24, %c0_25] : memref<32x32xf32, #tpu.memory_space<vmem>>, vector<32x32xf32>
    %cst_26 = arith.constant dense<0.000000e+00> : vector<16x32xf32>
    %27 = tpu.matmul %25, %26, %cst_26 {dimension_numbers = #tpu.dot_dimension_numbers<[1], [0], [0], [1], [0, 0, 1, 1], [], []>} : vector<16x32xf32>, vector<32x32xf32>, vector<16x32xf32> -> vector<16x32xf32>
    %c0_27 = arith.constant 0 : index
    %c0_28 = arith.constant 0 : index
    %28 = vector.load %arg11[%c0_27, %c0_28] : memref<1x32xf32, #tpu.memory_space<vmem>>, vector<1x32xf32>
    %29 = vector.broadcast %28 : vector<1x32xf32> to vector<16x32xf32>
    %30 = arith.addf %27, %29 : vector<16x32xf32>
    %cst_29 = arith.constant 0.000000e+00 : f32
    %31 = vector.broadcast %cst_29 : f32 to vector<16x32xf32>
    %32 = arith.maximumf %30, %31 : vector<16x32xf32>
    %33 = vector.broadcast %3 : vector<16x1xf32> to vector<16x32xf32>
    %34 = arith.mulf %32, %33 : vector<16x32xf32>
    %cst_30 = arith.constant dense<0.000000e+00> : vector<2x32xf32>
    %35 = tpu.matmul %4, %34, %cst_30 {dimension_numbers = #tpu.dot_dimension_numbers<[1], [0], [0], [1], [0, 0, 1, 1], [], []>} : vector<2x16xf32>, vector<16x32xf32>, vector<2x32xf32> -> vector<2x32xf32>
    %c0_31 = arith.constant 0 : index
    %c0_32 = arith.constant 0 : index
    %36 = vector.load %arg12[%c0_31, %c0_32] : memref<2x32xf32, #tpu.memory_space<vmem>>, vector<2x32xf32>
    tpu.vector_store %arg12[%c0_31, %c0_32], %35 {strides = array<i32>} : memref<2x32xf32, #tpu.memory_space<vmem>>, vector<2x32xf32>,
    return
  }
}

</mosaic_0001>

<bundles_post_ra>
// kernel: tpu_custom_call.1
= control target key start
LH: loop header
LB: loop body
LE: loop exit
PB: predicated region body
PF: predicated region fallthrough
CT: control target
= control target key end

     0   :  { %vm60_vm0 = vcmask 130048   ;;  %s1063_s0 = inlined_call_operand.vmem [shape: f32[16,16], index: 0, kind: input, shape index: {}]   ;;  %s1064_s1 = inlined_call_operand.vmem [shape: f32[16,128], index: 1, kind: input, shape index: {}]   ;;  %s1065_s2 = inlined_call_operand.vmem [shape: f32[16,16], index: 2, kind: input, shape index: {}]   ;;  %s1066_s3 = inlined_call_operand.vmem [shape: f32[16,1], index: 3, kind: input, shape index: {}]   ;;  %s1067_s4 = inlined_call_operand.vmem [shape: f32[2,16], index: 4, kind: input, shape index: {}]   ;;  %s1068_s5 = inlined_call_operand.vmem [shape: f32[16,128], index: 5, kind: input, shape index: {}]   ;;  %s1069_s6 = inlined_call_operand.vmem [shape: f32[1,128], index: 6, kind: input, shape index: {}]   ;;  %s1070_s7 = inlined_call_operand.vmem [shape: f32[128,32], index: 7, kind: input, shape index: {}]   ;;  %s1071_s8 = inlined_call_operand.vmem [shape: f32[32,32], index: 8, kind: input, shape index: {}]   ;;  %s1072_s9 = inlined_call_operand.vmem [shape: f32[1,32], index: 9, kind: input, shape index: {}]   ;;  %s1073_s10 = inlined_call_operand.vmem [shape: f32[32,32], index: 10, kind: input, shape index: {}]   ;;  %s1074_s11 = inlined_call_operand.vmem [shape: f32[1,32], index: 11, kind: input, shape index: {}]   ;;  %s1075_s12 = inlined_call_operand.hbm [shape: f32[2,32], index: 12, kind: output, shape index: {}]  }
   0x1   :  { %v52_v0 = vld [vmem:[%s1068_s5 + $0x8] sm:$0xff]  ;;  %v51_v1 = vld [vmem:[%s1068_s5] sm:$0xff]  ;;  %v159_v3 = vld [vmem:[%s1070_s7 + $0x78] sm:$0xff] }
   0x2   :  { %v42_v2 = vld [vmem:[%s1063_s0] sm:$0xff]  ;;  %744 = vmatprep.subr.mxu0 %v52_v0  ;;  %v158_v4 = vld [vmem:[%s1070_s7 + $0x70] sm:$0xff]  ;;  %v43_v5 = vld [vmem:[%s1063_s0 + $0x8] sm:$0xff]  ;;  %751 = vmatprep.subr.mxu1 %v159_v3 }
   0x3   :  { %748 = vmatprep.mubr.msk.f32.mxu0 %vm60_vm0, %v42_v2  ;;  %745 = vmatpush3.msra.mxu0 %v52_v0  ;;  %v157_v6 = vld [vmem:[%s1070_s7 + $0x68] sm:$0xff]  ;;  %v156_v7 = vld [vmem:[%s1070_s7 + $0x60] sm:$0xff] }
   0x4   :  { %746 = vmatprep.subr.mxu0 %v51_v1  ;;  %752 = vmatpush3.msra.mxu1 %v159_v3 }
   0x5   :  { %747 = vmatpush3.msra.mxu0 %v51_v1  ;;  %753 = vmatprep.subr.mxu1 %v158_v4 }
   0x6   :  { %749 = vmatmul.mubr.msk.f32.vlgmr.msra.gmra.mxu0 %vm60_vm0, %v43_v5  ;;  %754 = vmatpush3.msra.mxu1 %v158_v4 }
   0x7   :  { %17 = vsyncpa [#allocation3], 0  ;;  %755 = vmatprep.subr.mxu1 %v157_v6  ;;  %v155_v8 = vld [vmem:[%s1070_s7 + $0x58] sm:$0xff]  ;;  %v154_v9 = vld [vmem:[%s1070_s7 + $0x50] sm:$0xff]  ;;  %v856_v21 = vmov 0   ;;  %vm339_vm1 = vcmask 261120  }
   0x8   :  { %756 = vmatpush3.msra.mxu1 %v157_v6  ;;  %v153_v10 = vld [vmem:[%s1070_s7 + $0x48] sm:$0xff]  ;;  %v152_v11 = vld [vmem:[%s1070_s7 + $0x40] sm:$0xff]  ;;  %v151_v12 = vld [vmem:[%s1070_s7 + $0x38] sm:$0xff]  ;;  %833 = vset.pattern.permute.xlu0 %v856_v21  ;;  %v857_v61 = vmov 0.0   ;;  %vm858_vm2 = vmmov 0   ;;  %vm669_vm3 = vcmask 254976  }
   0x9   :  { %757 = vmatprep.subr.mxu1 %v156_v7  ;;  %v150_v13 = vld [vmem:[%s1070_s7 + $0x30] sm:$0xff]  ;;  %v149_v14 = vld [vmem:[%s1070_s7 + $0x28] sm:$0xff]  ;;  %v148_v15 = vld [vmem:[%s1070_s7 + $0x20] sm:$0xff] }
   0xa   :  { %758 = vmatpush3.msra.mxu1 %v156_v7  ;;  %v147_v16 = vld [vmem:[%s1070_s7 + $0x18] sm:$0xff]  ;;  %v146_v17 = vld [vmem:[%s1070_s7 + $0x10] sm:$0xff]  ;;  %v145_v18 = vld [vmem:[%s1070_s7 + $0x8] sm:$0xff] }
   0xb   :  { %759 = vmatprep.subr.mxu1 %v155_v8  ;;  %v144_v19 = vld [vmem:[%s1070_s7] sm:$0xff]  ;;  %v49_v20 = vld [vmem:[%s1066_s3 + $0x8] sm:$0xff]  ;;  %v331_v40 = vld [vmem:[%s1071_s8 + $0x18] sm:$0xff] }
   0xc   :  { %760 = vmatpush3.msra.mxu1 %v155_v8  ;;  %242 = vperm.xlu0 %833, %v49_v20   ;;  %v48_v22 = vld [vmem:[%s1066_s3] sm:$0xff]  ;;  %v45_v28 = vld [vmem:[%s1064_s1 + $0x8] sm:$0xff]  ;;  %v330_v41 = vld [vmem:[%s1071_s8 + $0x10] sm:$0xff] }
   0xd   :  { %761 = vmatprep.subr.mxu1 %v154_v9  ;;  %v685_v23 = vld [vmem:[%s1069_s6] ss:$0 sm:$0xff]  ;;  %v47_v39 = vld [vmem:[%s1065_s2 + $0x8] sm:$0xff]  ;;  %v503_v55 = vld [vmem:[%s1073_s10 + $0x18] sm:$0xff] }
   0xe   :  { %762 = vmatpush3.msra.mxu1 %v154_v9  ;;  %v44_v27 = vld [vmem:[%s1064_s1] sm:$0xff]  ;;  %v329_v42 = vld [vmem:[%s1071_s8 + $0x8] sm:$0xff]  ;;  %v502_v56 = vld [vmem:[%s1073_s10 + $0x10] sm:$0xff] }
   0xf   :  { %763 = vmatprep.subr.mxu1 %v153_v10  ;;  %v46_v32 = vld [vmem:[%s1065_s2] sm:$0xff]  ;;  %v501_v57 = vld [vmem:[%s1073_s10 + $0x8] sm:$0xff] }
  0x10   :  { %764 = vmatpush3.msra.mxu1 %v153_v10  ;;  %237 = vperm.xlu0 %833, %v48_v22   ;;  %v328_v43 = vld [vmem:[%s1071_s8] sm:$0xff] }
  0x11   :  { %765 = vmatprep.subr.mxu1 %v152_v11  ;;  %790 = vmatprep.mubr.msk.f32.mxu0 %vm60_vm0, %v46_v32  ;;  %v690_v46 = vld [vmem:[%s1072_s9] ss:$0 sm:$0xff] }
  0x12   :  { %766 = vmatpush3.msra.mxu1 %v152_v11  ;;  %v500_v58 = vld [vmem:[%s1073_s10] sm:$0xff] }
  0x13   :  { %767 = vmatprep.subr.mxu1 %v151_v12  ;;  %v695_v62 = vld [vmem:[%s1074_s11] ss:$0 sm:$0xff]  ;;  %s859_s11 = smov [#allocation2]  }
  0x14   :  { %768 = vmatpush3.msra.mxu1 %v151_v12  ;;  %v50_v7 = vld [vmem:[%s1067_s4] sm:$0x3]  ;;  %s677_s28 = sshll.u32 %s859_s11, 4  ;;  %s678_s28 = int_to_ptr.vmem [resolvable:$true] %s677_s28 }
  0x15   :  { %769 = vmatprep.subr.mxu1 %v150_v13  ;;  %s834_s29 = scalar_lea.vmem %s678_s28, 32  ;;  %p839_p1 = scmp.lt.s32.totalorder %s678_s28, %s678_s28 }
  0x16   :  { %770 = vmatpush3.msra.mxu1 %v150_v13  ;;  %p835_p0 = scmp.ne.s32.totalorder %s678_s28, %s834_s29  ;;  %p840_p2 = scmp.lt.s32.totalorder %s834_s29, %s834_s29 }
  0x17   :  { %771 = vmatprep.subr.mxu1 %v149_v14 }
  0x18   :  { %772 = vmatpush3.msra.mxu1 %v149_v14  ;;  %p841_p3 = por %p840_p2, %p839_p1 }
  0x19   :  { %773 = vmatprep.subr.mxu1 %v148_v15 }
  0x1a   :  { %774 = vmatpush3.msra.mxu1 %v148_v15  ;;  %p842_p4 = pnand %p841_p3, %p835_p0 }
  0x1b   :  { %775 = vmatprep.subr.mxu1 %v147_v16 }
  0x1c   :  { %776 = vmatpush3.msra.mxu1 %v147_v16 }
  0x1d   :  { %777 = vmatprep.subr.mxu1 %v146_v17 }
  0x1e   :  { %778 = vmatpush3.msra.mxu1 %v146_v17 }
  0x1f   :  { %779 = vmatprep.subr.mxu1 %v145_v18 }
  0x20   :  { %780 = vmatpush3.msra.mxu1 %v145_v18 }
  0x21   :  { %781 = vmatprep.subr.mxu1 %v144_v19 }
  0x22   :  { %782 = vmatpush3.msra.mxu1 %v144_v19 }
  0x87   :  { %v1006_v33 = vpop.permute.xlu0 %242 }
  0x8b   :  { %v1009_v36 = vpop.permute.xlu0 %237 }
  0xc6   :  { %v750_v24 = vpop.f32.mrf.mxu0 }
  0xc7   :  { %v139_v25 = vadd.f32 %v750_v24, %v685_v23 }
  0xc8   :  { %v133_v26 = vpop.f32.mrf.mxu0 }
  0xc9   :  { %v134_v29 = vadd.f32 %v685_v23, %v133_v26  ;;  %v143_v31 = vmul.f32 %v139_v25, %v45_v28 }
  0xcb   :  { %v142_v30 = vmul.f32 %v134_v29, %v44_v27 }
  0xcd   :  { %783 = vmatprep.mubr.f32.mxu1 %v142_v30 }
  0xce   :  { %784 = vmatmul.mubr.f32.vlgmr.msra.gmra.mxu1 %v143_v31 }
 0x18e   :  { %v785_v34 = vpop.f32.mrf.mxu1 }
 0x18f   :  { %v246_v35 = vmul.f32 %v785_v34, %v1006_v33 }
 0x190   :  { %v226_v37 = vpop.f32.mrf.mxu1 }
 0x191   :  { %v245_v38 = vmul.f32 %v1009_v36, %v226_v37  ;;  %786 = vmatprep.subr.mxu0 %v246_v35 }
 0x192   :  { %787 = vmatpush3.msra.mxu0 %v246_v35 }
 0x193   :  { %788 = vmatprep.subr.mxu0 %v245_v38 }
 0x194   :  { %789 = vmatpush3.msra.mxu0 %v245_v38 }
 0x195   :  { %791 = vmatmul.mubr.msk.f32.vlgmr.msra.gmra.mxu0 %vm60_vm0, %v47_v39  ;;  %793 = vmatprep.subr.mxu0 %v331_v40 }
 0x196   :  { %794 = vmatpush3.msra.mxu0 %v331_v40 }
 0x197   :  { %795 = vmatprep.subr.mxu0 %v330_v41 }
 0x198   :  { %796 = vmatpush3.msra.mxu0 %v330_v41 }
 0x199   :  { %797 = vmatprep.subr.mxu0 %v329_v42 }
 0x19a   :  { %798 = vmatpush3.msra.mxu0 %v329_v42 }
 0x19b   :  { %799 = vmatprep.subr.mxu0 %v328_v43 }
 0x19c   :  { %800 = vmatpush3.msra.mxu0 %v328_v43 }
 0x255   :  { %v792_v44 = vpop.f32.mrf.mxu0 }
 0x257   :  { %v319_v45 = vpop.f32.mrf.mxu0 }
 0x258   :  { %801 = vmatprep.mubr.msk.f32.mxu0 %vm339_vm1, %v319_v45 }
 0x259   :  { %802 = vmatmul.mubr.msk.f32.vlgmr.msra.gmra.mxu0 %vm339_vm1, %v792_v44 }
 0x25a   :  { %808 = vmatprep.mubr.msk.f32.mxu0 %vm60_vm0, %v46_v32 }
 0x319   :  { %v803_v47 = vpop.f32.mrf.mxu0 }
 0x31a   :  { %v418_v48 = vadd.f32 %v803_v47, %v690_v46 }
 0x31b   :  { %v412_v49 = vpop.f32.mrf.mxu0 }
 0x31c   :  { %v422_v50 = vmax.f32 %v418_v48, 0.0  ;;  %v413_v51 = vadd.f32 %v690_v46, %v412_v49 }
 0x31e   :  { %v424_v52 = vmul.f32 %v422_v50, %v1006_v33  ;;  %v421_v53 = vmax.f32 %v413_v51, 0.0 }
 0x320   :  { %v423_v54 = vmul.f32 %v421_v53, %v1009_v36  ;;  %804 = vmatprep.subr.mxu0 %v424_v52 }
 0x321   :  { %805 = vmatpush3.msra.mxu0 %v424_v52 }
 0x322   :  { %806 = vmatprep.subr.mxu0 %v423_v54 }
 0x323   :  { %807 = vmatpush3.msra.mxu0 %v423_v54 }
 0x324   :  { %809 = vmatmul.mubr.msk.f32.vlgmr.msra.gmra.mxu0 %vm60_vm0, %v47_v39  ;;  %811 = vmatprep.subr.mxu0 %v503_v55 }
 0x325   :  { %812 = vmatpush3.msra.mxu0 %v503_v55 }
 0x326   :  { %813 = vmatprep.subr.mxu0 %v502_v56 }
 0x327   :  { %814 = vmatpush3.msra.mxu0 %v502_v56 }
 0x328   :  { %815 = vmatprep.subr.mxu0 %v501_v57 }
 0x329   :  { %816 = vmatpush3.msra.mxu0 %v501_v57 }
 0x32a   :  { %817 = vmatprep.subr.mxu0 %v500_v58 }
 0x32b   :  { %818 = vmatpush3.msra.mxu0 %v500_v58 }
 0x32c   :  { %822 = vmatprep.subr.mxu0 %v857_v61 }
 0x3e4   :  { %v810_v59 = vpop.f32.mrf.mxu0 }
 0x3e6   :  { %v491_v60 = vpop.f32.mrf.mxu0 }
 0x3e7   :  { %819 = vmatprep.mubr.msk.f32.mxu0 %vm339_vm1, %v491_v60 }
 0x3e8   :  { %820 = vmatmul.mubr.msk.f32.vlgmr.msra.gmra.mxu0 %vm339_vm1, %v810_v59 }
 0x3e9   :  { %826 = vmatprep.mubr.msk.f32.mxu0 %vm858_vm2, %v857_v61 }
 0x4a8   :  { %v821_v63 = vpop.f32.mrf.mxu0 }
 0x4a9   :  { %v589_v0 = vadd.f32 %v821_v63, %v695_v62 }
 0x4aa   :  { %v583_v1 = vpop.f32.mrf.mxu0 }
 0x4ab   :  { %v593_v2 = vmax.f32 %v589_v0, 0.0  ;;  %v584_v3 = vadd.f32 %v695_v62, %v583_v1 }
 0x4ad   :  { %v595_v4 = vmul.f32 %v593_v2, %v1006_v33  ;;  %v592_v5 = vmax.f32 %v584_v3, 0.0 }
 0x4af   :  { %v594_v6 = vmul.f32 %v592_v5, %v1009_v36  ;;  %823 = vmatpush3.msra.mxu0 %v595_v4 }
 0x4b0   :  { %824 = vmatprep.subr.mxu0 %v857_v61 }
 0x4b1   :  { %825 = vmatpush3.msra.mxu0 %v594_v6 }
 0x4b2   :  { %827 = vmatmul.mubr.msk.f32.vlgmr.msra.gmra.mxu0 %vm60_vm0, %v50_v7 }
 0x572   :  { %v665_v8 = vpop.f32.mrf.mxu0 }
 0x573   :  { %670 = vst.msk [vmem:[#allocation2] sm:$0x3] %vm669_vm3, %v665_v8 }
 0x574   :  { %v828_v9 = vpop.f32.mrf.mxu0 }
 0x575   :  { %845 = shalt.err (!%p842_p4)
}
 0x576   :  { %680 = dma.vmem_to_hbm [thread:$0]  %s678_s28, 32, %s1075_s12, [#allocation3]  }
 0x577   :  { %854 = dma.done.wait [#allocation3], 32  }
 0x578   :  { %855 = vsyncadd [#allocation3], 4294967264 }
 0x579   :  { %684 = vsyncpa [#allocation3], 1 }

</bundles_post_ra>
